<compile_context>
chip_gen: v6e
topology: v6e:2x2x1
jax: 0.10.0
libtpu: 0.0.40
codegen_flags: <defaults>
</compile_context>

<pallas_src>
import jax
import jax.numpy as jnp
from jax.experimental import pallas as pl
from jax.experimental.pallas import tpu as pltpu

IN_DIM = 17    # HalfCheetah observation dim
OUT_DIM = 6    # action dim

# Below this row count a single gridless full-VMEM block is strictly fastest
# (launch-overhead bound; ~1 KB VMEM per row, so far below every scoped limit).
_GRIDLESS_MAX_ROWS = 4096
# Row block used by the tiled (large-batch) path; multiple of 8 sublanes.
_ROW_BLOCK = 2048


def _policy_kernel(x_ref, w_ref, b_ref, o_ref):
    # x_ref: (rows, 17) f32, w_ref: (17, 6) bf16, b_ref: (1, 6) f32,
    # o_ref: (rows, 6) f32.
    # Cast x to bf16 in-kernel (VPU) so the MXU gets bf16 operands in a single
    # pass; accumulate in f32.
    x_bf16 = x_ref[...].astype(jnp.bfloat16)
    acc = jnp.dot(x_bf16, w_ref[...], preferred_element_type=jnp.float32)
    o_ref[...] = acc + b_ref[...]


def prepare_params(weight, bias):
    """One-time parameter prep (outside the per-call path).

    weight: (6, 17) PyTorch layout, bias: (6,).
    Returns W^T as bf16 (17, 6) and bias as f32 (1, 6).
    """
    w_t = weight.T.astype(jnp.bfloat16)            # (17, 6) bf16 MXU operand
    b_p = bias.reshape(1, OUT_DIM).astype(jnp.float32)
    return w_t, b_p


def _forward_gridless(x, w_t, b_p):
    B = x.shape[0]
    return pl.pallas_call(
        _policy_kernel,
        out_shape=jax.ShapeDtypeStruct((B, OUT_DIM), jnp.float32),
        in_specs=[
            pl.BlockSpec(memory_space=pltpu.MemorySpace.VMEM),
            pl.BlockSpec(memory_space=pltpu.MemorySpace.VMEM),
            pl.BlockSpec(memory_space=pltpu.MemorySpace.VMEM),
        ],
        out_specs=pl.BlockSpec(memory_space=pltpu.MemorySpace.VMEM),
    )(x, w_t, b_p)


def _forward_tiled(x, w_t, b_p, row_block):
    # 1-D parallel row grid: engages both v7x TensorCores and bounds per-buffer
    # VMEM tiles for very large batches.
    B = x.shape[0]
    grid = (pl.cdiv(B, row_block),)
    return pl.pallas_call(
        _policy_kernel,
        out_shape=jax.ShapeDtypeStruct((B, OUT_DIM), jnp.float32),
        grid=grid,
        in_specs=[
            pl.BlockSpec((row_block, IN_DIM), lambda i: (i, 0)),
            pl.BlockSpec((IN_DIM, OUT_DIM), lambda i: (0, 0)),
            pl.BlockSpec((1, OUT_DIM), lambda i: (0, 0)),
        ],
        out_specs=pl.BlockSpec((row_block, OUT_DIM), lambda i: (i, 0)),
        compiler_params=pltpu.CompilerParams(
            dimension_semantics=("parallel",)),
    )(x, w_t, b_p)


@jax.jit
def policy_forward(x, w_t, b_p):
    """x: (B, 17) f32; w_t: (17, 6) bf16; b_p: (1, 6) f32 -> (B, 6) f32."""
    B = x.shape[0]
    if B <= _GRIDLESS_MAX_ROWS:
        return _forward_gridless(x, w_t, b_p)
    return _forward_tiled(x, w_t, b_p, _ROW_BLOCK)


if __name__ == "__main__":
    key = jax.random.PRNGKey(0)
    k_x, k_w, k_b = jax.random.split(key, 3)

    # Batch many observations per call (multiple of 8 sublanes) to amortize
    # launch overhead; total data is still tiny (<20 KB).
    B = 256
    x = jax.random.normal(k_x, (B, IN_DIM), dtype=jnp.float32)

    # Deterministic parameter init mimicking nn.Linear(17, 6) default
    # (uniform in [-1/sqrt(fan_in), 1/sqrt(fan_in)]).
    bound = 1.0 / jnp.sqrt(float(IN_DIM))
    weight = jax.random.uniform(k_w, (OUT_DIM, IN_DIM), jnp.float32, -bound, bound)
    bias = jax.random.uniform(k_b, (OUT_DIM,), jnp.float32, -bound, bound)

    # One-time parameter prep (transpose + bf16), hoisted out of the per-call
    # path.
    w_t, b_p = prepare_params(weight, bias)
    w_t, b_p = jax.block_until_ready((w_t, b_p))

    # ---- gridless small-batch path ----
    out = policy_forward(x, w_t, b_p)
    out = jax.block_until_ready(out)

    ref = x @ weight.T + bias
    assert out.shape == (B, OUT_DIM)
    # bf16 MXU operands with f32 accumulation -> loosened tolerance.
    assert jnp.allclose(out, ref, atol=3e-2, rtol=3e-2)

    # ---- tiled large-batch path (exercised at a modest size) ----
    B2, row_block = 512, 128
    x2 = jax.random.normal(jax.random.PRNGKey(1), (B2, IN_DIM), dtype=jnp.float32)
    tiled = jax.jit(_forward_tiled, static_argnames="row_block")
    out2 = jax.block_until_ready(tiled(x2, w_t, b_p, row_block=row_block))
    ref2 = x2 @ weight.T + bias
    assert out2.shape == (B2, OUT_DIM)
    assert jnp.allclose(out2, ref2, atol=3e-2, rtol=3e-2)

    print("KERNEL_OK")
</pallas_src>

<mosaic_0001>
module attributes {stable_mosaic.version = 11 : i64} {
  func.func @_policy_kernel(%arg0: memref<256x17xf32, #tpu.memory_space<vmem>>, %arg1: memref<17x6xbf16, #tpu.memory_space<vmem>>, %arg2: memref<1x6xf32, #tpu.memory_space<vmem>>, %arg3: memref<256x6xf32, #tpu.memory_space<vmem>>) attributes {dimension_semantics = [], scalar_prefetch = 0 : i64, scratch_operands = 0 : i64, tpu.core_type = #tpu.core_type<tc>} {
    %c0 = arith.constant 0 : index
    %c0_0 = arith.constant 0 : index
    %0 = vector.load %arg0[%c0, %c0_0] : memref<256x17xf32, #tpu.memory_space<vmem>>, vector<256x17xf32>
    %1 = arith.truncf %0 : vector<256x17xf32> to vector<256x17xbf16>
    %c0_1 = arith.constant 0 : index
    %c0_2 = arith.constant 0 : index
    %2 = vector.load %arg1[%c0_1, %c0_2] : memref<17x6xbf16, #tpu.memory_space<vmem>>, vector<17x6xbf16>
    %cst = arith.constant dense<0.000000e+00> : vector<256x6xf32>
    %3 = tpu.matmul %1, %2, %cst {dimension_numbers = #tpu.dot_dimension_numbers<[1], [0], [0], [1], [0, 0, 1, 1], [], []>} : vector<256x17xbf16>, vector<17x6xbf16>, vector<256x6xf32> -> vector<256x6xf32>
    %c0_3 = arith.constant 0 : index
    %c0_4 = arith.constant 0 : index
    %4 = vector.load %arg2[%c0_3, %c0_4] : memref<1x6xf32, #tpu.memory_space<vmem>>, vector<1x6xf32>
    %5 = vector.broadcast %4 : vector<1x6xf32> to vector<256x6xf32>
    %6 = arith.addf %3, %5 : vector<256x6xf32>
    %c0_5 = arith.constant 0 : index
    %c0_6 = arith.constant 0 : index
    %7 = vector.load %arg3[%c0_5, %c0_6] : memref<256x6xf32, #tpu.memory_space<vmem>>, vector<256x6xf32>
    tpu.vector_store %arg3[%c0_5, %c0_6], %6 {strides = array<i32>} : memref<256x6xf32, #tpu.memory_space<vmem>>, vector<256x6xf32>,
    return
  }
}

</mosaic_0001>

<bundles_post_ra>
// kernel: policy_forward.1
= control target key start
LH: loop header
LB: loop body
LE: loop exit
PB: predicated region body
PF: predicated region fallthrough
CT: control target
= control target key end

     0   :  { %vm131_vm0 = vcmask 1040384   ;;  %v415_v1 = vmov 0   ;;  %vm82_vm1 = vcmask 138240   ;;  %vm298_vm2 = vcmask 48128   ;;  %s719_s1 = inlined_call_operand.vmem [shape: bf16[17,6], index: 1, kind: input, shape index: {}]   ;;  %s720_s0 = inlined_call_operand.vmem [shape: f32[256,17], index: 0, kind: input, shape index: {}]   ;;  %s721_s2 = inlined_call_operand.vmem [shape: f32[1,6], index: 2, kind: input, shape index: {}]   ;;  %s722_s3 = inlined_call_operand.vmem [shape: f32[256,6], index: 3, kind: output, shape index: {}]  }
   0x1   :  { %v413_v0 = vld [vmem:[%s719_s1 + $0x8] ss:$0 sps:$4 sm:$0x11]   ;;  %v133_v2 = vsel %vm131_vm0, 65535, %v415_v1  ;;  %v414_v3 = vld [vmem:[%s719_s1] sm:$0xff]   ;;  %v17_v11 = vld [vmem:[%s720_s0 + $0x10] sm:$0xff] }
   0x2   :  { %v135_v4 = vand.u32 %v413_v0, %v133_v2  ;;  %v15_v5 = vld [vmem:[%s720_s0] sm:$0xff]  ;;  %v16_v6 = vld [vmem:[%s720_s0 + $0x8] sm:$0xff]  ;;  %v18_v12 = vld [vmem:[%s720_s0 + $0x18] sm:$0xff] }
   0x3   :  { %v31_v7 = vld [vmem:[%s720_s0 + $0x80] sm:$0xff]  ;;  %v47_v8 = vpack.c.bf16 %v16_v6, %v15_v5  ;;  %v32_v9 = vld [vmem:[%s720_s0 + $0x88] sm:$0xff]  ;;  %v33_v13 = vld [vmem:[%s720_s0 + $0x90] sm:$0xff]  ;;  %v48_v19 = vpack.c.bf16 %v18_v12, %v17_v11 }
   0x4   :  { %372 = vmatprep.subr.bf16.mxu0 %v135_v4  ;;  %408 = vmatprep.subr.bf16.mxu1 %v135_v4  ;;  %v55_v10 = vpack.c.bf16 %v32_v9, %v31_v7  ;;  %v34_v14 = vld [vmem:[%s720_s0 + $0x98] sm:$0xff]  ;;  %v19_v15 = vld [vmem:[%s720_s0 + $0x20] sm:$0xff]  ;;  %v20_v16 = vld [vmem:[%s720_s0 + $0x28] sm:$0xff] }
   0x5   :  { %373 = vmatpush3.bf16.msra.mxu0 %v135_v4  ;;  %410 = vmatpush3.bf16.msra.mxu1 %v135_v4  ;;  %v35_v17 = vld [vmem:[%s720_s0 + $0xa0] sm:$0xff]  ;;  %v36_v18 = vld [vmem:[%s720_s0 + $0xa8] sm:$0xff]  ;;  %v56_v20 = vpack.c.bf16 %v34_v14, %v33_v13  ;;  %v49_v21 = vpack.c.bf16 %v20_v16, %v19_v15  ;;  %v21_v23 = vld [vmem:[%s720_s0 + $0x30] sm:$0xff] }
   0x6   :  { %374 = vmatprep.subr.bf16.mxu0 %v414_v3  ;;  %409 = vmatprep.subr.bf16.mxu1 %v414_v3  ;;  %v57_v22 = vpack.c.bf16 %v36_v18, %v35_v17  ;;  %v22_v24 = vld [vmem:[%s720_s0 + $0x38] sm:$0xff]  ;;  %v37_v25 = vld [vmem:[%s720_s0 + $0xb0] sm:$0xff]  ;;  %v23_v27 = vld [vmem:[%s720_s0 + $0x40] sm:$0xff] }
   0x7   :  { %376 = vmatprep.mubr.msk.bf16.mxu0 %vm82_vm1, %v47_v8  ;;  %392 = vmatprep.mubr.msk.bf16.mxu1 %vm82_vm1, %v55_v10  ;;  %v38_v26 = vld [vmem:[%s720_s0 + $0xb8] sm:$0xff]  ;;  %v24_v28 = vld [vmem:[%s720_s0 + $0x48] sm:$0xff]  ;;  %v39_v29 = vld [vmem:[%s720_s0 + $0xc0] sm:$0xff]  ;;  %v50_v31 = vpack.c.bf16 %v22_v24, %v21_v23 }
   0x8   :  { %v40_v30 = vld [vmem:[%s720_s0 + $0xc8] sm:$0xff]  ;;  %v58_v32 = vpack.c.bf16 %v38_v26, %v37_v25  ;;  %v51_v33 = vpack.c.bf16 %v24_v28, %v23_v27  ;;  %v25_v35 = vld [vmem:[%s720_s0 + $0x50] sm:$0xff]  ;;  %v26_v36 = vld [vmem:[%s720_s0 + $0x58] sm:$0xff] }
   0x9   :  { %375 = vmatpush3.bf16.msra.mxu0 %v414_v3  ;;  %411 = vmatpush3.bf16.msra.mxu1 %v414_v3  ;;  %v59_v34 = vpack.c.bf16 %v40_v30, %v39_v29  ;;  %v41_v37 = vld [vmem:[%s720_s0 + $0xd0] sm:$0xff]  ;;  %v42_v38 = vld [vmem:[%s720_s0 + $0xd8] sm:$0xff]  ;;  %v27_v39 = vld [vmem:[%s720_s0 + $0x60] sm:$0xff]  ;;  %v52_v43 = vpack.c.bf16 %v26_v36, %v25_v35 }
   0xa   :  { %v28_v40 = vld [vmem:[%s720_s0 + $0x68] sm:$0xff]  ;;  %v43_v41 = vld [vmem:[%s720_s0 + $0xe0] sm:$0xff]  ;;  %v60_v44 = vpack.c.bf16 %v42_v38, %v41_v37  ;;  %v29_v47 = vld [vmem:[%s720_s0 + $0x70] sm:$0xff] }
   0xb   :  { %v44_v42 = vld [vmem:[%s720_s0 + $0xe8] sm:$0xff]  ;;  %v53_v45 = vpack.c.bf16 %v28_v40, %v27_v39  ;;  %v30_v48 = vld [vmem:[%s720_s0 + $0x78] sm:$0xff]  ;;  %v45_v49 = vld [vmem:[%s720_s0 + $0xf0] sm:$0xff] }
   0xc   :  { %377 = vmatmul.mubr.msk.bf16.vlgmr.msra.gmra.mxu0 %vm82_vm1, %v48_v19  ;;  %393 = vmatmul.mubr.msk.bf16.vlgmr.msra.gmra.mxu1 %vm82_vm1, %v56_v20  ;;  %v61_v46 = vpack.c.bf16 %v44_v42, %v43_v41  ;;  %v46_v50 = vld [vmem:[%s720_s0 + $0xf8] sm:$0xff]  ;;  %v54_v51 = vpack.c.bf16 %v30_v48, %v29_v47  ;;  %v557_v53 = vld [vmem:[%s721_s2] ss:$0 sm:$0xff] }
   0xd   :  { %380 = vmatprep.mubr.msk.bf16.mxu0 %vm82_vm1, %v49_v21  ;;  %396 = vmatprep.mubr.msk.bf16.mxu1 %vm82_vm1, %v57_v22  ;;  %v62_v52 = vpack.c.bf16 %v46_v50, %v45_v49 }
  0x14   :  { %381 = vmatmul.mubr.msk.bf16.gmra.mxu0 %vm82_vm1, %v50_v31  ;;  %397 = vmatmul.mubr.msk.bf16.gmra.mxu1 %vm82_vm1, %v58_v32 }
  0x15   :  { %384 = vmatprep.mubr.msk.bf16.mxu0 %vm82_vm1, %v51_v33  ;;  %400 = vmatprep.mubr.msk.bf16.mxu1 %vm82_vm1, %v59_v34 }
  0x1c   :  { %385 = vmatmul.mubr.msk.bf16.gmra.mxu0 %vm82_vm1, %v52_v43  ;;  %401 = vmatmul.mubr.msk.bf16.gmra.mxu1 %vm82_vm1, %v60_v44 }
  0x1d   :  { %388 = vmatprep.mubr.msk.bf16.mxu0 %vm82_vm1, %v53_v45  ;;  %404 = vmatprep.mubr.msk.bf16.mxu1 %vm82_vm1, %v61_v46 }
  0x24   :  { %389 = vmatmul.mubr.msk.bf16.gmra.mxu0 %vm82_vm1, %v54_v51  ;;  %405 = vmatmul.mubr.msk.bf16.gmra.mxu1 %vm82_vm1, %v62_v52 }
  0xcc   :  { %v378_v54 = vpop.f32.mrf.mxu0  ;;  %v394_v55 = vpop.f32.mrf.mxu1 }
  0xcd   :  { %v180_v56 = vadd.f32 %v378_v54, %v557_v53  ;;  %v244_v57 = vadd.f32 %v394_v55, %v557_v53 }
  0xce   :  { %v171_v58 = vpop.f32.mrf.mxu0  ;;  %v235_v59 = vpop.f32.mrf.mxu1 }
  0xcf   :  { %301 = vst.msk [vmem:[%s722_s3 + $0x10] sm:$0xff] %vm298_vm2, %v180_v56  ;;  %317 = vst.msk [vmem:[%s722_s3 + $0x90] sm:$0xff] %vm298_vm2, %v244_v57  ;;  %v172_v60 = vadd.f32 %v557_v53, %v171_v58  ;;  %v236_v61 = vadd.f32 %v557_v53, %v235_v59 }
  0xd0   :  { %v379_v62 = vpop.f32.mrf.mxu0  ;;  %v395_v63 = vpop.f32.mrf.mxu1 }
  0xd1   :  { %299 = vst.msk [vmem:[%s722_s3] sm:$0xff] %vm298_vm2, %v172_v60  ;;  %315 = vst.msk [vmem:[%s722_s3 + $0x80] sm:$0xff] %vm298_vm2, %v236_v61  ;;  %v183_v0 = vadd.f32 %v379_v62, %v557_v53  ;;  %v247_v1 = vadd.f32 %v395_v63, %v557_v53 }
  0xd2   :  { %v174_v2 = vpop.f32.mrf.mxu0  ;;  %v238_v3 = vpop.f32.mrf.mxu1 }
  0xd3   :  { %302 = vst.msk [vmem:[%s722_s3 + $0x18] sm:$0xff] %vm298_vm2, %v183_v0  ;;  %318 = vst.msk [vmem:[%s722_s3 + $0x98] sm:$0xff] %vm298_vm2, %v247_v1  ;;  %v175_v4 = vadd.f32 %v557_v53, %v174_v2  ;;  %v239_v5 = vadd.f32 %v557_v53, %v238_v3 }
  0xd4   :  { %v382_v6 = vpop.f32.mrf.mxu0  ;;  %v398_v7 = vpop.f32.mrf.mxu1 }
  0xd5   :  { %300 = vst.msk [vmem:[%s722_s3 + $0x8] sm:$0xff] %vm298_vm2, %v175_v4  ;;  %316 = vst.msk [vmem:[%s722_s3 + $0x88] sm:$0xff] %vm298_vm2, %v239_v5  ;;  %v196_v8 = vadd.f32 %v382_v6, %v557_v53  ;;  %v260_v9 = vadd.f32 %v398_v7, %v557_v53 }
  0xd6   :  { %v187_v10 = vpop.f32.mrf.mxu0  ;;  %v251_v11 = vpop.f32.mrf.mxu1 }
  0xd7   :  { %305 = vst.msk [vmem:[%s722_s3 + $0x30] sm:$0xff] %vm298_vm2, %v196_v8  ;;  %321 = vst.msk [vmem:[%s722_s3 + $0xb0] sm:$0xff] %vm298_vm2, %v260_v9  ;;  %v188_v12 = vadd.f32 %v557_v53, %v187_v10  ;;  %v252_v13 = vadd.f32 %v557_v53, %v251_v11 }
  0xd8   :  { %v383_v14 = vpop.f32.mrf.mxu0  ;;  %v399_v15 = vpop.f32.mrf.mxu1 }
  0xd9   :  { %303 = vst.msk [vmem:[%s722_s3 + $0x20] sm:$0xff] %vm298_vm2, %v188_v12  ;;  %319 = vst.msk [vmem:[%s722_s3 + $0xa0] sm:$0xff] %vm298_vm2, %v252_v13  ;;  %v199_v16 = vadd.f32 %v383_v14, %v557_v53  ;;  %v263_v17 = vadd.f32 %v399_v15, %v557_v53 }
  0xda   :  { %v190_v18 = vpop.f32.mrf.mxu0  ;;  %v254_v19 = vpop.f32.mrf.mxu1 }
  0xdb   :  { %306 = vst.msk [vmem:[%s722_s3 + $0x38] sm:$0xff] %vm298_vm2, %v199_v16  ;;  %322 = vst.msk [vmem:[%s722_s3 + $0xb8] sm:$0xff] %vm298_vm2, %v263_v17  ;;  %v191_v20 = vadd.f32 %v557_v53, %v190_v18  ;;  %v255_v21 = vadd.f32 %v557_v53, %v254_v19 }
  0xdc   :  { %v386_v22 = vpop.f32.mrf.mxu0  ;;  %v402_v23 = vpop.f32.mrf.mxu1 }
  0xdd   :  { %304 = vst.msk [vmem:[%s722_s3 + $0x28] sm:$0xff] %vm298_vm2, %v191_v20  ;;  %320 = vst.msk [vmem:[%s722_s3 + $0xa8] sm:$0xff] %vm298_vm2, %v255_v21  ;;  %v212_v24 = vadd.f32 %v386_v22, %v557_v53  ;;  %v276_v25 = vadd.f32 %v402_v23, %v557_v53 }
  0xde   :  { %v203_v26 = vpop.f32.mrf.mxu0  ;;  %v267_v27 = vpop.f32.mrf.mxu1 }
  0xdf   :  { %309 = vst.msk [vmem:[%s722_s3 + $0x50] sm:$0xff] %vm298_vm2, %v212_v24  ;;  %325 = vst.msk [vmem:[%s722_s3 + $0xd0] sm:$0xff] %vm298_vm2, %v276_v25  ;;  %v204_v28 = vadd.f32 %v557_v53, %v203_v26  ;;  %v268_v29 = vadd.f32 %v557_v53, %v267_v27 }
  0xe0   :  { %v387_v30 = vpop.f32.mrf.mxu0  ;;  %v403_v31 = vpop.f32.mrf.mxu1 }
  0xe1   :  { %307 = vst.msk [vmem:[%s722_s3 + $0x40] sm:$0xff] %vm298_vm2, %v204_v28  ;;  %323 = vst.msk [vmem:[%s722_s3 + $0xc0] sm:$0xff] %vm298_vm2, %v268_v29  ;;  %v215_v32 = vadd.f32 %v387_v30, %v557_v53  ;;  %v279_v33 = vadd.f32 %v403_v31, %v557_v53 }
  0xe2   :  { %v206_v34 = vpop.f32.mrf.mxu0  ;;  %v270_v35 = vpop.f32.mrf.mxu1 }
  0xe3   :  { %310 = vst.msk [vmem:[%s722_s3 + $0x58] sm:$0xff] %vm298_vm2, %v215_v32  ;;  %326 = vst.msk [vmem:[%s722_s3 + $0xd8] sm:$0xff] %vm298_vm2, %v279_v33  ;;  %v207_v36 = vadd.f32 %v557_v53, %v206_v34  ;;  %v271_v37 = vadd.f32 %v557_v53, %v270_v35 }
  0xe4   :  { %v390_v38 = vpop.f32.mrf.mxu0  ;;  %v406_v39 = vpop.f32.mrf.mxu1 }
  0xe5   :  { %308 = vst.msk [vmem:[%s722_s3 + $0x48] sm:$0xff] %vm298_vm2, %v207_v36  ;;  %324 = vst.msk [vmem:[%s722_s3 + $0xc8] sm:$0xff] %vm298_vm2, %v271_v37  ;;  %v228_v40 = vadd.f32 %v390_v38, %v557_v53  ;;  %v292_v41 = vadd.f32 %v406_v39, %v557_v53 }
  0xe6   :  { %v219_v42 = vpop.f32.mrf.mxu0  ;;  %v283_v43 = vpop.f32.mrf.mxu1 }
  0xe7   :  { %313 = vst.msk [vmem:[%s722_s3 + $0x70] sm:$0xff] %vm298_vm2, %v228_v40  ;;  %329 = vst.msk [vmem:[%s722_s3 + $0xf0] sm:$0xff] %vm298_vm2, %v292_v41  ;;  %v220_v44 = vadd.f32 %v557_v53, %v219_v42  ;;  %v284_v45 = vadd.f32 %v557_v53, %v283_v43 }
  0xe8   :  { %v391_v46 = vpop.f32.mrf.mxu0  ;;  %v407_v47 = vpop.f32.mrf.mxu1 }
  0xe9   :  { %311 = vst.msk [vmem:[%s722_s3 + $0x60] sm:$0xff] %vm298_vm2, %v220_v44  ;;  %327 = vst.msk [vmem:[%s722_s3 + $0xe0] sm:$0xff] %vm298_vm2, %v284_v45  ;;  %v231_v48 = vadd.f32 %v391_v46, %v557_v53  ;;  %v295_v49 = vadd.f32 %v407_v47, %v557_v53 }
  0xea   :  { %v222_v50 = vpop.f32.mrf.mxu0  ;;  %v286_v51 = vpop.f32.mrf.mxu1 }
  0xeb   :  { %314 = vst.msk [vmem:[%s722_s3 + $0x78] sm:$0xff] %vm298_vm2, %v231_v48  ;;  %330 = vst.msk [vmem:[%s722_s3 + $0xf8] sm:$0xff] %vm298_vm2, %v295_v49  ;;  %v223_v52 = vadd.f32 %v557_v53, %v222_v50  ;;  %v287_v54 = vadd.f32 %v557_v53, %v286_v51 }
  0xed   :  { %312 = vst.msk [vmem:[%s722_s3 + $0x68] sm:$0xff] %vm298_vm2, %v223_v52  ;;  %328 = vst.msk [vmem:[%s722_s3 + $0xe8] sm:$0xff] %vm298_vm2, %v287_v54 }

</bundles_post_ra>
